<compile_context>
chip_gen: v5e
topology: v5e:2x2
jax: 0.10.0
libtpu: 0.0.40
codegen_flags: <defaults>
</compile_context>

<pallas_src>
import functools

import jax
import jax.numpy as jnp
from jax import lax
from jax.experimental import pallas as pl
from jax.experimental.pallas import tpu as pltpu

LANE = 128
SUBLANE = 8


def _round_up(x, m):
    return ((x + m - 1) // m) * m


def _sublane_align(dtype):
    # Minimum second-minor (sublane) block multiple per dtype:
    # 4-byte -> 8, 2-byte -> 16, 1-byte -> 32.
    return {4: 8, 2: 16, 1: 32}.get(jnp.dtype(dtype).itemsize, 8)


def _device_kind():
    try:
        return jax.devices()[0].device_kind.lower()
    except Exception:
        return ""


def _detect_num_tensorcores():
    """Per-chip TensorCore count: 1 on v5e/v6e, 2 on v7x."""
    try:
        info = pltpu.get_tpu_info()
        for attr in ("num_cores", "core_count", "num_tensorcores", "tensorcore_count"):
            v = getattr(info, attr, None)
            if isinstance(v, int) and 1 <= v <= 8:
                return v
    except Exception:
        pass
    return 2 if "v7" in _device_kind() else 1


def _default_tile_rows():
    # Bigger tiles amortize the ~0.35us per-step pipeline overhead; v7x's
    # ~3.2 TB/s per-TC HBM path needs ~8K-row tiles, v5e/v6e are fine at 4K.
    return 8192 if "v7" in _device_kind() else 4096


def _masked_rmse_kernel(o_ref, d_ref, m_ref, loss_ref, msum_ref, *,
                        tm, chunk, blocks_per_core, rows_valid, needs_mask):
    c = pl.program_id(0)
    j = pl.program_id(1)

    # Output blocks are resident across the inner ("arbitrary") axis: init once
    # per core, accumulate every step, written back when the core index changes.
    @pl.when(j == 0)
    def _():
        loss_ref[...] = jnp.zeros_like(loss_ref)
        msum_ref[...] = jnp.zeros_like(msum_ref)

    block_row0 = (c * blocks_per_core + j) * tm
    groups = tm // chunk

    def compute(o, d, m, row_start):
        o = o.astype(jnp.float32)
        d = d.astype(jnp.float32)
        m = m.astype(jnp.float32)
        diff = o - d
        contrib = diff * diff * m
        if needs_mask:
            rows = lax.broadcasted_iota(jnp.int32, o.shape, 0)
            valid = (row_start + rows) < rows_valid
            contrib = jnp.where(valid, contrib, 0.0)
            m = jnp.where(valid, m, 0.0)
        n = o.shape[0]
        # (n,128) -> (n//8, 8, 128): native vreg tiles reduced with plain VPU
        # adds into a single (8,128) accumulator (no per-step XLU reduce).
        return (contrib.reshape(n // SUBLANE, SUBLANE, LANE).sum(axis=0),
                m.reshape(n // SUBLANE, SUBLANE, LANE).sum(axis=0))

    if groups == 1:
        dl, dm = compute(o_ref[...], d_ref[...], m_ref[...], block_row0)
        loss_ref[...] += dl
        msum_ref[...] += dm
    else:
        def body(g, carry):
            lacc, macc = carry
            r0 = pl.multiple_of(g * chunk, chunk)
            dl, dm = compute(o_ref[pl.ds(r0, chunk), :],
                             d_ref[pl.ds(r0, chunk), :],
                             m_ref[pl.ds(r0, chunk), :],
                             block_row0 + r0)
            return lacc + dl, macc + dm

        zero = jnp.zeros((SUBLANE, LANE), jnp.float32)
        lacc, macc = lax.fori_loop(0, groups, body, (zero, zero))
        loss_ref[...] += lacc
        msum_ref[...] += macc


def custom_loss(output, depth, mask, *, tile_rows=None, num_cores=None):
    """Masked RMSE: sqrt( sum((output - depth)**2 * mask) / sum(mask) )."""
    assert output.shape == depth.shape == mask.shape

    # Bool masks: view as uint8 (free bitcast when supported); no wrapper-side
    # full-array float conversion — the f32 upcast happens in-kernel.
    if mask.dtype == jnp.bool_:
        try:
            mask = lax.bitcast_convert_type(mask, jnp.uint8)
        except Exception:
            mask = mask.astype(jnp.uint8)

    o_flat = output.reshape(-1)
    d_flat = depth.reshape(-1)
    m_flat = mask.reshape(-1)

    total = int(o_flat.shape[0])
    rows0 = total // LANE
    tail = total - rows0 * LANE

    def _tail_sums():
        o_t = o_flat[rows0 * LANE:].astype(jnp.float32)
        d_t = d_flat[rows0 * LANE:].astype(jnp.float32)
        m_t = m_flat[rows0 * LANE:].astype(jnp.float32)
        dt = o_t - d_t
        return jnp.sum(dt * dt * m_t), jnp.sum(m_t)

    if rows0 == 0:
        # Fewer than 128 elements: not worth a kernel launch.
        loss_sum, mask_sum = _tail_sums()
        return jnp.sqrt(loss_sum / mask_sum)

    # Lane-aligned bulk as (rows0, 128); when total % 128 == 0 this is just a
    # reshape (no pad / no slice copy). The < 128-element tail is reduced in
    # plain JAX and added to the partial sums.
    if tail:
        bulk = lambda x: x[: rows0 * LANE].reshape(rows0, LANE)
    else:
        bulk = lambda x: x.reshape(rows0, LANE)
    o2, d2, m2 = bulk(o_flat), bulk(d_flat), bulk(m_flat)

    align = max(_sublane_align(x.dtype) for x in (o2, d2, m2))
    if tile_rows is None:
        tile_rows = _default_tile_rows()
    tile_rows = max(int(tile_rows), align)
    if num_cores is None:
        num_cores = _detect_num_tensorcores()

    # Tile rows chosen to minimize ragged/padded rows: smallest aligned size
    # that covers rows0 with the target block count.
    nblocks_target = max(1, pl.cdiv(rows0, tile_rows))
    tm = _round_up(pl.cdiv(rows0, nblocks_target), align)
    nblocks = pl.cdiv(rows0, tm)
    ncores = num_cores if nblocks >= num_cores else 1
    blocks_per_core = pl.cdiv(nblocks, ncores)

    # Inner chunk: bounds live f32 intermediates to ~chunk*128*4 bytes each so
    # large tiles never blow VMEM; must be a multiple of `align` and divide tm.
    chunk = align
    for cand in (512, 256, 128, 64, 32, 16, 8):
        if cand % align == 0 and tm % cand == 0:
            chunk = cand
            break

    needs_mask = ncores * blocks_per_core * tm > rows0
    last_block = nblocks - 1

    kernel = functools.partial(
        _masked_rmse_kernel, tm=tm, chunk=chunk,
        blocks_per_core=blocks_per_core, rows_valid=rows0, needs_mask=needs_mask)

    def in_idx(c, j):
        # Clamp so logical blocks past the end (only when nblocks % ncores != 0)
        # re-read the last real block; the in-kernel row mask zeroes their
        # contribution, and no DMA ever goes out of bounds.
        return (jnp.minimum(c * blocks_per_core + j, last_block), 0)

    in_spec = pl.BlockSpec((tm, LANE), in_idx)
    out_spec = pl.BlockSpec((SUBLANE, LANE), lambda c, j: (c, 0))

    # Double-buffered input tiles + headroom for outputs / chunk intermediates.
    in_bytes = sum(jnp.dtype(x.dtype).itemsize for x in (o2, d2, m2)) * tm * LANE
    vmem_limit = int(2 * in_bytes + (8 << 20))

    loss_parts, mask_parts = pl.pallas_call(
        kernel,
        out_shape=(
            jax.ShapeDtypeStruct((ncores * SUBLANE, LANE), jnp.float32),
            jax.ShapeDtypeStruct((ncores * SUBLANE, LANE), jnp.float32),
        ),
        grid_spec=pltpu.PrefetchScalarGridSpec(
            num_scalar_prefetch=0,
            grid=(ncores, blocks_per_core),
            in_specs=[in_spec, in_spec, in_spec],
            out_specs=[out_spec, out_spec],
        ),
        compiler_params=pltpu.CompilerParams(
            # TODO(synk): on v7x, confirm with xprof that this axis shards across
            # both TensorCores; if not, switch it to pltpu.CORE_PARALLEL.
            dimension_semantics=("parallel", "arbitrary"),
            vmem_limit_bytes=vmem_limit),
    )(o2, d2, m2)

    # Tiny epilogue: single cross-lane reduce + sqrt over (ncores*8, 128).
    loss_sum = jnp.sum(loss_parts)
    mask_sum = jnp.sum(mask_parts)
    if tail:
        t_loss, t_mask = _tail_sums()
        loss_sum = loss_sum + t_loss
        mask_sum = mask_sum + t_mask
    return jnp.sqrt(loss_sum / mask_sum)


def _reference(output, depth, mask):
    mask = mask.astype(jnp.float32)
    diff = output.astype(jnp.float32) - depth.astype(jnp.float32)
    loss = (diff * diff * mask).sum()
    return jnp.sqrt(loss / mask.sum())


if __name__ == "__main__":
    key = jax.random.PRNGKey(0)
    k1, k2, k3 = jax.random.split(key, 3)

    # NCHW, like the depth-prediction outputs of the MAE finetuning model.
    B, C, H, W = 2, 4, 16, 16
    output = jax.random.normal(k1, (B, C, H, W), dtype=jnp.float32)
    depth = jax.random.normal(k2, (B, C, H, W), dtype=jnp.float32)
    mask = (jax.random.uniform(k3, (B, C, H, W)) > 0.3).astype(jnp.float32)

    rmse = custom_loss(output, depth, mask)
    jax.block_until_ready(rmse)
    ref = _reference(output, depth, mask)
    assert jnp.allclose(rmse, ref, rtol=1e-5, atol=1e-5), (rmse, ref)

    # Multi-block accumulation path (small tile forces several grid steps).
    o_b = jax.random.normal(k1, (2, 4, 32, 32), dtype=jnp.float32)
    d_b = jax.random.normal(k2, (2, 4, 32, 32), dtype=jnp.float32)
    m_bool = jax.random.uniform(k3, (2, 4, 32, 32)) > 0.3
    m_f32 = m_bool.astype(jnp.float32)
    rmse_b = custom_loss(o_b, d_b, m_f32, tile_rows=32)
    jax.block_until_ready(rmse_b)
    assert jnp.allclose(rmse_b, _reference(o_b, d_b, m_f32), rtol=1e-5, atol=1e-5)

    # Bool-mask path (streams as uint8, no wrapper-side float conversion).
    rmse_c = custom_loss(o_b, d_b, m_bool)
    jax.block_until_ready(rmse_c)
    assert jnp.allclose(rmse_c, _reference(o_b, d_b, m_f32), rtol=1e-5, atol=1e-5)

    # Ragged path: rows not a multiple of the tile + a sub-128 lane tail,
    # handled by the in-kernel row mask and the plain-JAX tail reduce (no pad).
    o_r = jax.random.normal(k1, (2, 3, 23, 31), dtype=jnp.float32)
    d_r = jax.random.normal(k2, (2, 3, 23, 31), dtype=jnp.float32)
    m_r = (jax.random.uniform(k3, (2, 3, 23, 31)) > 0.3).astype(jnp.float32)
    rmse_r = custom_loss(o_r, d_r, m_r, tile_rows=16)
    jax.block_until_ready(rmse_r)
    assert jnp.allclose(rmse_r, _reference(o_r, d_r, m_r), rtol=1e-5, atol=1e-5)

    print("KERNEL_OK")
</pallas_src>

<mosaic_0001>
module attributes {stable_mosaic.version = 11 : i64} {
  func.func @_masked_rmse_kernel(%arg0: i32, %arg1: i32, %arg2: memref<16x128xf32, #tpu.memory_space<vmem>>, %arg3: memref<16x128xf32, #tpu.memory_space<vmem>>, %arg4: memref<16x128xf32, #tpu.memory_space<vmem>>, %arg5: memref<8x128xf32, #tpu.memory_space<vmem>>, %arg6: memref<8x128xf32, #tpu.memory_space<vmem>>) attributes {dimension_semantics = [#tpu.dimension_semantics<parallel>, #tpu.dimension_semantics<arbitrary>], iteration_bounds = array<i64: 1, 1>, scalar_prefetch = 0 : i64, scratch_operands = 0 : i64, tpu.core_type = #tpu.core_type<tc>, window_params = [{transform_indices = @transform_0, window_bounds = array<i64: 16, 128>}, {transform_indices = @transform_1, window_bounds = array<i64: 16, 128>}, {transform_indices = @transform_2, window_bounds = array<i64: 16, 128>}, {transform_indices = @transform_3, window_bounds = array<i64: 8, 128>}, {transform_indices = @transform_4, window_bounds = array<i64: 8, 128>}]} {
    %c0_i32 = arith.constant 0 : i32
    %0 = arith.cmpi eq, %arg1, %c0_i32 : i32
    %1 = arith.extui %0 : i1 to i32
    %c0_i32_0 = arith.constant 0 : i32
    %2 = arith.cmpi ne, %1, %c0_i32_0 : i32
    scf.if %2 {
      %cst_15 = arith.constant 0.000000e+00 : f32
      %19 = vector.broadcast %cst_15 : f32 to vector<8x128xf32>
      %c0_16 = arith.constant 0 : index
      %c0_17 = arith.constant 0 : index
      %20 = vector.load %arg5[%c0_16, %c0_17] : memref<8x128xf32, #tpu.memory_space<vmem>>, vector<8x128xf32>
      tpu.vector_store %arg5[%c0_16, %c0_17], %19 {strides = array<i32>} : memref<8x128xf32, #tpu.memory_space<vmem>>, vector<8x128xf32>,
      %cst_18 = arith.constant 0.000000e+00 : f32
      %21 = vector.broadcast %cst_18 : f32 to vector<8x128xf32>
      %c0_19 = arith.constant 0 : index
      %c0_20 = arith.constant 0 : index
      %22 = vector.load %arg6[%c0_19, %c0_20] : memref<8x128xf32, #tpu.memory_space<vmem>>, vector<8x128xf32>
      tpu.vector_store %arg6[%c0_19, %c0_20], %21 {strides = array<i32>} : memref<8x128xf32, #tpu.memory_space<vmem>>, vector<8x128xf32>,
    } else {
    }
    %c0 = arith.constant 0 : index
    %c0_1 = arith.constant 0 : index
    %3 = vector.load %arg2[%c0, %c0_1] : memref<16x128xf32, #tpu.memory_space<vmem>>, vector<16x128xf32>
    %c0_2 = arith.constant 0 : index
    %c0_3 = arith.constant 0 : index
    %4 = vector.load %arg3[%c0_2, %c0_3] : memref<16x128xf32, #tpu.memory_space<vmem>>, vector<16x128xf32>
    %c0_4 = arith.constant 0 : index
    %c0_5 = arith.constant 0 : index
    %5 = vector.load %arg4[%c0_4, %c0_5] : memref<16x128xf32, #tpu.memory_space<vmem>>, vector<16x128xf32>
    %6 = arith.subf %3, %4 : vector<16x128xf32>
    %7 = arith.mulf %6, %6 : vector<16x128xf32>
    %8 = arith.mulf %7, %5 : vector<16x128xf32>
    %9 = vector.shape_cast %8 : vector<16x128xf32> to vector<2x8x128xf32>
    %cst = arith.constant dense<0.000000e+00> : vector<8x128xf32>
    %10 = vector.multi_reduction <add>, %9, %cst [0] : vector<2x8x128xf32> to vector<8x128xf32>
    %11 = vector.shape_cast %5 : vector<16x128xf32> to vector<2x8x128xf32>
    %cst_6 = arith.constant dense<0.000000e+00> : vector<8x128xf32>
    %12 = vector.multi_reduction <add>, %11, %cst_6 [0] : vector<2x8x128xf32> to vector<8x128xf32>
    %c0_7 = arith.constant 0 : index
    %c0_8 = arith.constant 0 : index
    %13 = vector.load %arg5[%c0_7, %c0_8] : memref<8x128xf32, #tpu.memory_space<vmem>>, vector<8x128xf32>
    %14 = arith.addf %13, %10 : vector<8x128xf32>
    %c0_9 = arith.constant 0 : index
    %c0_10 = arith.constant 0 : index
    %15 = vector.load %arg5[%c0_9, %c0_10] : memref<8x128xf32, #tpu.memory_space<vmem>>, vector<8x128xf32>
    tpu.vector_store %arg5[%c0_9, %c0_10], %14 {strides = array<i32>} : memref<8x128xf32, #tpu.memory_space<vmem>>, vector<8x128xf32>,
    %c0_11 = arith.constant 0 : index
    %c0_12 = arith.constant 0 : index
    %16 = vector.load %arg6[%c0_11, %c0_12] : memref<8x128xf32, #tpu.memory_space<vmem>>, vector<8x128xf32>
    %17 = arith.addf %16, %12 : vector<8x128xf32>
    %c0_13 = arith.constant 0 : index
    %c0_14 = arith.constant 0 : index
    %18 = vector.load %arg6[%c0_13, %c0_14] : memref<8x128xf32, #tpu.memory_space<vmem>>, vector<8x128xf32>
    tpu.vector_store %arg6[%c0_13, %c0_14], %17 {strides = array<i32>} : memref<8x128xf32, #tpu.memory_space<vmem>>, vector<8x128xf32>,
    return
  }
  func.func @transform_0(%arg0: i32, %arg1: i32) -> (i32, i32) {
    %c1_i32 = arith.constant 1 : i32
    %0 = arith.muli %arg0, %c1_i32 : i32
    %1 = arith.addi %0, %arg1 : i32
    %c0_i32 = arith.constant 0 : i32
    %2 = arith.minsi %1, %c0_i32 : i32
    %c0_i32_0 = arith.constant 0 : i32
    %c0_i32_1 = arith.constant 0 : i32
    return %2, %c0_i32_0 : i32, i32
  }
  func.func @transform_1(%arg0: i32, %arg1: i32) -> (i32, i32) {
    %c1_i32 = arith.constant 1 : i32
    %0 = arith.muli %arg0, %c1_i32 : i32
    %1 = arith.addi %0, %arg1 : i32
    %c0_i32 = arith.constant 0 : i32
    %2 = arith.minsi %1, %c0_i32 : i32
    %c0_i32_0 = arith.constant 0 : i32
    %c0_i32_1 = arith.constant 0 : i32
    return %2, %c0_i32_0 : i32, i32
  }
  func.func @transform_2(%arg0: i32, %arg1: i32) -> (i32, i32) {
    %c1_i32 = arith.constant 1 : i32
    %0 = arith.muli %arg0, %c1_i32 : i32
    %1 = arith.addi %0, %arg1 : i32
    %c0_i32 = arith.constant 0 : i32
    %2 = arith.minsi %1, %c0_i32 : i32
    %c0_i32_0 = arith.constant 0 : i32
    %c0_i32_1 = arith.constant 0 : i32
    return %2, %c0_i32_0 : i32, i32
  }
  func.func @transform_3(%arg0: i32, %arg1: i32) -> (i32, i32) {
    %c0_i32 = arith.constant 0 : i32
    %c0_i32_0 = arith.constant 0 : i32
    return %arg0, %c0_i32 : i32, i32
  }
  func.func @transform_4(%arg0: i32, %arg1: i32) -> (i32, i32) {
    %c0_i32 = arith.constant 0 : i32
    %c0_i32_0 = arith.constant 0 : i32
    return %arg0, %c0_i32 : i32, i32
  }
}

</mosaic_0001>

<bundles_post_ra>
// kernel: tpu_custom_call.1
= control target key start
LH: loop header
LB: loop body
LE: loop exit
PB: predicated region body
PF: predicated region fallthrough
CT: control target
= control target key end

     0   :  { %10 = vsyncpa [#allocation3], 0  ;;  %s344_s0 = inlined_call_operand.hbm [shape: f32[16,128], index: 0, kind: input, shape index: {}]   ;;  %s345_s1 = inlined_call_operand.hbm [shape: f32[16,128], index: 1, kind: input, shape index: {}]   ;;  %s346_s2 = inlined_call_operand.hbm [shape: f32[16,128], index: 2, kind: input, shape index: {}]   ;;  %s347_s3 = inlined_call_operand.hbm [shape: f32[8,128], index: 3, kind: output, shape index: {0}]   ;;  %s348_s4 = inlined_call_operand.hbm [shape: f32[8,128], index: 4, kind: output, shape index: {1}]  }
   0x1   :  { %11 = vsyncpa [#allocation6], 0 }
   0x2   :  { %12 = vsyncpa [#allocation4], 0 }
   0x3   :  { %13 = vsyncpa [#allocation10], 0  ;;  %s43_s17 = sshll.u32 %s345_s1, 4  ;;  %s297_s18 = smov [#allocation5]   ;;  %s44_s17 = int_to_ptr.hbm [resolvable:$true] %s43_s17 }
   0x4   :  { %s45_s19 = sshll.u32 %s297_s18, 4  ;;  %s24_s22 = sshll.u32 %s344_s0, 4  ;;  %s46_s19 = int_to_ptr.vmem [resolvable:$true] %s45_s19  ;;  %s25_s22 = int_to_ptr.hbm [resolvable:$true] %s24_s22 }
   0x5   :  { %s298_s23 = smov 128   ;;  %s299_s24 = smov 8  }
   0x6   :  { %51 = dma.hbm_to_vmem [thread:$0]  %s44_s17, 256, %s46_s19, [#allocation6], %s298_s23, %s298_s23, %s299_s24  }
   0x7   :  { %s300_s25 = smov [#allocation2]   ;;  %s62_s29 = sshll.u32 %s346_s2, 4  ;;  %s63_s29 = int_to_ptr.hbm [resolvable:$true] %s62_s29 }
   0x8   :  { %s26_s26 = sshll.u32 %s300_s25, 4  ;;  %s301_s1 = smov [#allocation7]   ;;  %s27_s26 = int_to_ptr.vmem [resolvable:$true] %s26_s26 }
   0x9   :  { %32 = dma.hbm_to_vmem [thread:$0]  %s25_s22, 256, %s27_s26, [#allocation3], %s298_s23, %s298_s23, %s299_s24  }
   0xa   :  { %s64_s30 = sshll.u32 %s301_s1, 4  ;;  %s65_s30 = int_to_ptr.vmem [resolvable:$true] %s64_s30 }
   0xb   :  { %70 = dma.hbm_to_vmem [thread:$0]  %s63_s29, 256, %s65_s30, [#allocation6], %s298_s23, %s298_s23, %s299_s24  }
   0xc   :  { %289 = dma.done.wait [#allocation3], 256  }
   0xd   :  { %290 = vsyncadd [#allocation3], 4294967040 }
   0xe   :  { %291 = dma.done.wait [#allocation6], 512  }
   0xf   :  { %292 = vsyncadd [#allocation6], 4294966784  ;;  %v101_v0 = vld [vmem:[#allocation2] sm:$0xff]  ;;  %v102_v1 = vld [vmem:[#allocation2 + $0x8] sm:$0xff]  ;;  %s302_s0 = smov [#allocation9]   ;;  %s139_s7 = sshll.u32 %s348_s4, 4  ;;  %s140_s7 = int_to_ptr.hbm [resolvable:$true] %s139_s7 }
  0x10   :  { %v103_v2 = vld [vmem:[#allocation5] sm:$0xff]  ;;  %v104_v3 = vld [vmem:[#allocation5 + $0x8] sm:$0xff]  ;;  %v105_v4 = vld [vmem:[#allocation7] sm:$0xff]  ;;  %s137_s2 = sshll.u32 %s302_s0, 4  ;;  %s303_s8 = smov [#allocation8]   ;;  %s138_s2 = int_to_ptr.vmem [resolvable:$true] %s137_s2 }
  0x11   :  { %v106_v5 = vld [vmem:[#allocation7 + $0x8] sm:$0xff]  ;;  %v107_v6 = vsub.f32 %v101_v0, %v103_v2  ;;  %v108_v7 = vsub.f32 %v102_v1, %v104_v3  ;;  %s126_s9 = sshll.u32 %s303_s8, 4  ;;  %s128_s12 = sshll.u32 %s347_s3, 4  ;;  %s127_s9 = int_to_ptr.vmem [resolvable:$true] %s126_s9  ;;  %s129_s12 = int_to_ptr.hbm [resolvable:$true] %s128_s12 }
  0x12   :  { %v114_v8 = vadd.f32 %v106_v5, %v105_v4 }
  0x13   :  { %v109_v9 = vmul.f32 %v107_v6, %v107_v6  ;;  %v110_v10 = vmul.f32 %v108_v7, %v108_v7 }
  0x14   :  { %120 = vst [vmem:[#allocation9] sm:$0xff] %v114_v8 }
  0x15   :  { %v111_v11 = vmul.f32 %v109_v9, %v105_v4  ;;  %v112_v12 = vmul.f32 %v110_v10, %v106_v5  ;;  %142 = dma.vmem_to_hbm [thread:$0]  %s138_s2, 128, %s140_s7, [#allocation10]  }
  0x17   :  { %v113_v13 = vadd.f32 %v112_v12, %v111_v11 }
  0x19   :  { %117 = vst [vmem:[#allocation8] sm:$0xff] %v113_v13 }
  0x1a   :  { %131 = dma.vmem_to_hbm [thread:$0]  %s127_s9, 128, %s129_s12, [#allocation4]  }
  0x1b   :  { %293 = dma.done.wait [#allocation4], 128  }
  0x1c   :  { %294 = vsyncadd [#allocation4], 4294967168 }
  0x1d   :  { %295 = dma.done.wait [#allocation10], 128  }
  0x1e   :  { %296 = vsyncadd [#allocation10], 4294967168 }
  0x1f   :  { %151 = vsyncpa [#allocation3], 1 }
  0x20   :  { %152 = vsyncpa [#allocation6], 1 }
  0x21   :  { %153 = vsyncpa [#allocation4], 1 }
  0x22   :  { %154 = vsyncpa [#allocation10], 1 }

</bundles_post_ra>
